<compile_context>
chip_gen: v5e
topology: v5e:2x2
jax: 0.10.0
libtpu: 0.0.40
codegen_flags: <defaults>
</compile_context>

<pallas_src>
import functools

import jax
import jax.numpy as jnp
from jax.experimental import pallas as pl
from jax.experimental.pallas import tpu as pltpu

# ---------------- config (synthetic small BERT + CNN head) ----------------
HIDDEN = 768            # fixed by nn.Conv1d(768, ...) in the PyTorch module
NUM_HEADS = 6           # head_dim = 128 (lane-dense)
HEAD_DIM = HIDDEN // NUM_HEADS
INTERMEDIATE = 3072
NUM_LAYERS = 2          # synthetic shallow encoder (BERT is a black box here)
VOCAB = 1000
MAX_POS = 64
TYPE_VOCAB = 2
NUM_FILTERS = 128
KERNEL_SIZES = (2, 3, 4)
NUM_CLASSES = 4
LN_EPS = 1e-12

# <= 48 MiB: valid on v7x (64 MiB physical VMEM), ample for the fused layer
# (~14 MiB single-buffered weights / ~28 MiB double-buffered fallback).
_COMPILER = dict(vmem_limit_bytes=48 * 1024 * 1024)


# ---------------- single-buffer (Buffered(1)) support probe ----------------
_SINGLE_BUFFER_OK = None


def _probe_kernel(x_ref, o_ref):
    o_ref[...] = x_ref[...]


def _single_buffer_supported():
    """One-time probe: does this build honor pipeline_mode=pl.Buffered(1)?"""
    global _SINGLE_BUFFER_OK
    if _SINGLE_BUFFER_OK is not None:
        return _SINGLE_BUFFER_OK
    try:
        spec = pl.BlockSpec((8, 128), lambda i: (0, 0),
                            pipeline_mode=pl.Buffered(1))
        out = pl.pallas_call(
            _probe_kernel,
            out_shape=jax.ShapeDtypeStruct((16, 128), jnp.float32),
            grid=(2,),
            in_specs=[spec],
            out_specs=pl.BlockSpec((8, 128), lambda i: (i, 0)),
        )(jnp.zeros((8, 128), jnp.float32))
        jax.block_until_ready(out)
        _SINGLE_BUFFER_OK = True
    except Exception:  # noqa: BLE001 -- any rejection -> double-buffer fallback
        _SINGLE_BUFFER_OK = False
    return _SINGLE_BUFFER_OK


def _const_spec(shape):
    """BlockSpec for an operand whose block index never changes (weights)."""
    ndim = len(shape)
    idx = lambda i: (0,) * ndim
    if _single_buffer_supported():
        return pl.BlockSpec(shape, idx, pipeline_mode=pl.Buffered(1))
    return pl.BlockSpec(shape, idx)


# ---------------- embedding LayerNorm kernel ----------------
def _layernorm_kernel(x_ref, g_ref, b_ref, o_ref):
    x = x_ref[0]                                             # (S, H) f32
    mu = jnp.mean(x, axis=-1, keepdims=True)
    var = jnp.mean(jnp.square(x - mu), axis=-1, keepdims=True)
    y = (x - mu) * jax.lax.rsqrt(var + LN_EPS)
    o_ref[0] = (y * g_ref[...] + b_ref[...]).astype(o_ref.dtype)


def layernorm(x, g, b):
    """x: (B, S, H) f32; g, b: (1, H) f32 -> (B, S, H) f32."""
    bsz, s, h = x.shape
    return pl.pallas_call(
        _layernorm_kernel,
        out_shape=jax.ShapeDtypeStruct((bsz, s, h), jnp.float32),
        grid=(bsz,),
        in_specs=[pl.BlockSpec((1, s, h), lambda i: (i, 0, 0)),
                  _const_spec((1, h)),
                  _const_spec((1, h))],
        out_specs=pl.BlockSpec((1, s, h), lambda i: (i, 0, 0)),
        compiler_params=pltpu.CompilerParams(
            dimension_semantics=("parallel",), **_COMPILER),
    )(x, g, b)


# ---------------- fused encoder-layer kernel (1 pallas_call per layer) -----
def _encoder_layer_kernel(x_ref, bias_ref,
                          w_qkv_ref, b_qkv_ref, wo_ref, bo_ref,
                          ln1_g_ref, ln1_b_ref,
                          w1_ref, b1_ref, w2_ref, b2_ref,
                          ln2_g_ref, ln2_b_ref,
                          o_ref, *, scale):
    x = x_ref[0]                                             # (S, H) f32
    bias = bias_ref[0]                                       # (1, S) additive key-pad mask
    s_len = x.shape[0]

    # ---- fused QKV projection (bf16 MXU operands, f32 accumulation) ----
    qkv = jnp.dot(x.astype(jnp.bfloat16), w_qkv_ref[...],
                  preferred_element_type=jnp.float32) + b_qkv_ref[...]   # (S, 3H)

    # ---- multi-head self-attention fused with the output projection ----
    # out = concat_h(ctx_h) @ wo  ==  sum_h ctx_h @ wo[h*dh:(h+1)*dh, :]
    # -> no merged-head concat / relayout, one live ctx head at a time.
    attn = jnp.zeros((s_len, HIDDEN), jnp.float32)
    for h in range(NUM_HEADS):
        lo = h * HEAD_DIM                                    # lane-aligned (128) slices
        q = qkv[:, lo:lo + HEAD_DIM].astype(jnp.bfloat16)
        k = qkv[:, HIDDEN + lo:HIDDEN + lo + HEAD_DIM].astype(jnp.bfloat16)
        v = qkv[:, 2 * HIDDEN + lo:2 * HIDDEN + lo + HEAD_DIM].astype(jnp.bfloat16)
        s = jax.lax.dot_general(q, k, (((1,), (1,)), ((), ())),
                                preferred_element_type=jnp.float32)      # (S, S)
        s = s * scale + bias                                 # f32 scale + pad mask
        m = jnp.max(s, axis=-1, keepdims=True)
        e = jnp.exp(s - m)
        p = e * pl.reciprocal(jnp.sum(e, axis=-1, keepdims=True), approx=True)
        ctx = jnp.dot(p.astype(jnp.bfloat16), v,
                      preferred_element_type=jnp.float32)                # (S, dh)
        attn = attn + jnp.dot(ctx.astype(jnp.bfloat16),
                              wo_ref[lo:lo + HEAD_DIM, :],               # sublane-aligned
                              preferred_element_type=jnp.float32)

    # ---- attention output: bias + residual + LayerNorm 1 ----
    y = attn + bo_ref[...] + x
    mu = jnp.mean(y, axis=-1, keepdims=True)
    var = jnp.mean(jnp.square(y - mu), axis=-1, keepdims=True)
    x1 = (y - mu) * jax.lax.rsqrt(var + LN_EPS) * ln1_g_ref[...] + ln1_b_ref[...]

    # ---- FFN up (GELU) + FFN down + residual + LayerNorm 2 ----
    h1 = jnp.dot(x1.astype(jnp.bfloat16), w1_ref[...],
                 preferred_element_type=jnp.float32) + b1_ref[...]
    # TODO(synk): HF BERT uses exact erf GELU; tanh-approx GELU is kept because
    # erf lowering in Mosaic is not guaranteed (encoder weights are synthetic).
    h1 = jax.nn.gelu(h1)
    y2 = jnp.dot(h1.astype(jnp.bfloat16), w2_ref[...],
                 preferred_element_type=jnp.float32) + b2_ref[...] + x1
    mu2 = jnp.mean(y2, axis=-1, keepdims=True)
    var2 = jnp.mean(jnp.square(y2 - mu2), axis=-1, keepdims=True)
    out = (y2 - mu2) * jax.lax.rsqrt(var2 + LN_EPS) * ln2_g_ref[...] + ln2_b_ref[...]
    o_ref[0] = out.astype(o_ref.dtype)


def encoder_layer(x, mask_bias, lyr):
    """x: (B, S, H) f32; mask_bias: (B, 1, S) additive -> (B, S, H) f32."""
    bsz, s, _ = x.shape
    scale = 1.0 / (HEAD_DIM ** 0.5)
    in_specs = [
        pl.BlockSpec((1, s, HIDDEN), lambda i: (i, 0, 0)),    # x (per batch row)
        pl.BlockSpec((1, 1, s), lambda i: (i, 0, 0)),         # mask bias
        _const_spec((HIDDEN, 3 * HIDDEN)),                    # w_qkv (bf16)
        _const_spec((1, 3 * HIDDEN)),                         # b_qkv
        _const_spec((HIDDEN, HIDDEN)),                        # wo (bf16)
        _const_spec((1, HIDDEN)),                             # bo
        _const_spec((1, HIDDEN)), _const_spec((1, HIDDEN)),   # ln1 gamma/beta
        _const_spec((HIDDEN, INTERMEDIATE)),                  # w1 (bf16)
        _const_spec((1, INTERMEDIATE)),                       # b1
        _const_spec((INTERMEDIATE, HIDDEN)),                  # w2 (bf16)
        _const_spec((1, HIDDEN)),                             # b2
        _const_spec((1, HIDDEN)), _const_spec((1, HIDDEN)),   # ln2 gamma/beta
    ]
    return pl.pallas_call(
        functools.partial(_encoder_layer_kernel, scale=scale),
        out_shape=jax.ShapeDtypeStruct((bsz, s, HIDDEN), jnp.float32),
        grid=(bsz,),
        in_specs=in_specs,
        out_specs=pl.BlockSpec((1, s, HIDDEN), lambda i: (i, 0, 0)),
        compiler_params=pltpu.CompilerParams(
            dimension_semantics=("parallel",), **_COMPILER),
    )(x, mask_bias,
      lyr["w_qkv"], lyr["b_qkv"], lyr["wo"], lyr["bo"],
      lyr["ln1_g"], lyr["ln1_b"],
      lyr["w1"], lyr["b1"], lyr["w2"], lyr["b2"],
      lyr["ln2_g"], lyr["ln2_b"])


# ---------------- fused CNN head (Conv1d k=2,3,4 + ReLU + max-pool + FC) ---
def _conv_fc_kernel(x_ref, *refs, seqlen):
    n_conv = len(KERNEL_SIZES)
    w_refs = refs[:n_conv]
    cb_ref, fcw_ref, fcb_ref, o_ref = refs[n_conv:]
    x = x_ref[0]                                             # (S, H) f32, read once
    row = jax.lax.broadcasted_iota(jnp.int32, (seqlen, NUM_FILTERS), 0)
    pooled = []
    for j, (ksz, w_ref) in enumerate(zip(KERNEL_SIZES, w_refs)):
        lout = seqlen - ksz + 1
        acc = jnp.zeros((seqlen, NUM_FILTERS), jnp.float32)
        for dk in range(ksz):                                # static unroll over taps
            # XLU sublane rotate instead of a misaligned slice; wrapped tail
            # rows are masked out before the max-pool.
            xs = x if dk == 0 else pltpu.roll(x, seqlen - dk, axis=0)
            acc = acc + jnp.dot(xs.astype(jnp.bfloat16), w_ref[dk],
                                preferred_element_type=jnp.float32)
        acc = jnp.maximum(acc + cb_ref[j:j + 1, :], 0.0)     # bias + ReLU
        acc = jnp.where(row < lout, acc, 0.0)                # ReLU>=0 so 0-mask is exact
        pooled.append(jnp.max(acc, axis=0, keepdims=True))   # max_pool1d over time
    cat = jnp.concatenate(pooled, axis=1)                    # (1, 3*F) lane-dense
    # TODO(synk): nn.Dropout(0.5) is identity at inference (eval mode); omitted.
    logits = jnp.dot(cat.astype(jnp.bfloat16), fcw_ref[...],
                     preferred_element_type=jnp.float32) + fcb_ref[...]
    o_ref[...] = logits.astype(o_ref.dtype)


def conv_fc_head(x, conv_ws, conv_b, fc_w, fc_b):
    """x: (B, S, H); conv_ws[i]: (k_i, H, F) bf16; conv_b: (3, F); fc_w: (3F, C)."""
    bsz, s, h = x.shape
    in_specs = [pl.BlockSpec((1, s, h), lambda i: (i, 0, 0))]
    in_specs += [_const_spec(w.shape) for w in conv_ws]
    in_specs += [_const_spec(conv_b.shape),
                 _const_spec(fc_w.shape),
                 _const_spec(fc_b.shape)]
    return pl.pallas_call(
        functools.partial(_conv_fc_kernel, seqlen=s),
        out_shape=jax.ShapeDtypeStruct((bsz, NUM_CLASSES), jnp.float32),
        grid=(bsz,),
        in_specs=in_specs,
        out_specs=pl.BlockSpec((1, NUM_CLASSES), lambda i: (i, 0)),
        compiler_params=pltpu.CompilerParams(
            dimension_semantics=("parallel",), **_COMPILER),
    )(x, *conv_ws, conv_b, fc_w, fc_b)


# ---------------- deterministic parameter init ----------------
def init_params(key):
    keys = jax.random.split(key, 64)
    it = iter(keys)

    def nrm(shape, std=0.02):
        return jax.random.normal(next(it), shape, jnp.float32) * std

    p = {
        "word_emb": nrm((VOCAB, HIDDEN)),
        "pos_emb": nrm((MAX_POS, HIDDEN)),
        "type_emb": nrm((TYPE_VOCAB, HIDDEN)),
        "emb_ln_g": jnp.ones((1, HIDDEN), jnp.float32),
        "emb_ln_b": jnp.zeros((1, HIDDEN), jnp.float32),
        "layers": [],
    }
    for _ in range(NUM_LAYERS):
        wq, wk, wv = (nrm((HIDDEN, HIDDEN)) for _ in range(3))
        p["layers"].append({
            # fused QKV projection: one lane-dense (768, 2304) bf16 weight
            "w_qkv": jnp.concatenate([wq, wk, wv], axis=1).astype(jnp.bfloat16),
            "b_qkv": jnp.zeros((1, 3 * HIDDEN), jnp.float32),
            "wo": nrm((HIDDEN, HIDDEN)).astype(jnp.bfloat16),
            "bo": jnp.zeros((1, HIDDEN), jnp.float32),
            "ln1_g": jnp.ones((1, HIDDEN), jnp.float32),
            "ln1_b": jnp.zeros((1, HIDDEN), jnp.float32),
            "w1": nrm((HIDDEN, INTERMEDIATE)).astype(jnp.bfloat16),
            "b1": jnp.zeros((1, INTERMEDIATE), jnp.float32),
            "w2": nrm((INTERMEDIATE, HIDDEN)).astype(jnp.bfloat16),
            "b2": jnp.zeros((1, HIDDEN), jnp.float32),
            "ln2_g": jnp.ones((1, HIDDEN), jnp.float32),
            "ln2_b": jnp.zeros((1, HIDDEN), jnp.float32),
        })
    conv_ws, conv_bs = [], []
    for k in KERNEL_SIZES:
        w_pt = nrm((NUM_FILTERS, HIDDEN, k), std=0.05)   # PyTorch Conv1d layout (F, C, k)
        # w_r[dk, c, f] = w_pt[f, c, dk]  ->  Conv1d == sum_dk X[t+dk, :] @ w_r[dk]
        conv_ws.append(jnp.transpose(w_pt, (2, 1, 0)).astype(jnp.bfloat16))
        conv_bs.append(nrm((NUM_FILTERS,), std=0.05))
    p["conv_ws"] = conv_ws
    p["conv_b"] = jnp.stack(conv_bs, axis=0)                         # (3, F) f32
    fc_w_pt = nrm((NUM_CLASSES, NUM_FILTERS * len(KERNEL_SIZES)), std=0.05)
    p["fc_w"] = jnp.transpose(fc_w_pt).astype(jnp.bfloat16)          # (3F, C)
    p["fc_b"] = jnp.zeros((1, NUM_CLASSES), jnp.float32)
    return p


# ---------------- forward pass ----------------
def bert_cnn_forward(params, input_ids, attention_mask, token_type_ids):
    bsz, s = input_ids.shape
    # ---- BERT embeddings (gathers are JAX glue; layernorm runs in Pallas) ----
    pos_ids = jnp.arange(s)[None, :]
    emb = (params["word_emb"][input_ids]
           + params["pos_emb"][pos_ids]
           + params["type_emb"][token_type_ids])                      # (B, S, H)
    x = layernorm(emb, params["emb_ln_g"], params["emb_ln_b"])

    mask_bias = ((1.0 - attention_mask.astype(jnp.float32)) * -1e9).reshape(bsz, 1, s)

    # ---- transformer encoder: ONE fused pallas_call per layer ----
    for lyr in params["layers"]:
        x = encoder_layer(x, mask_bias, lyr)                          # (B, S, H)

    # ---- fused CNN head: Conv1d(k=2,3,4)+ReLU+max-pool + FC in one kernel ----
    logits = conv_fc_head(x, params["conv_ws"], params["conv_b"],
                          params["fc_w"], params["fc_b"])             # (B, C)
    return logits


if __name__ == "__main__":
    key = jax.random.PRNGKey(0)
    pkey, ikey = jax.random.split(key)
    params = init_params(pkey)

    B, S = 2, 16
    input_ids = jax.random.randint(ikey, (B, S), 0, VOCAB, dtype=jnp.int32)
    attention_mask = jnp.ones((B, S), jnp.int32).at[1, 12:].set(0)   # pad tail of row 1
    token_type_ids = jnp.zeros((B, S), jnp.int32).at[:, 8:].set(1)

    logits = bert_cnn_forward(params, input_ids, attention_mask, token_type_ids)
    jax.block_until_ready(logits)
    assert logits.shape == (B, NUM_CLASSES)
    assert bool(jnp.all(jnp.isfinite(logits)))
    print("KERNEL_OK")
</pallas_src>

<mosaic_0001>
module attributes {stable_mosaic.version = 11 : i64} {
  func.func @_probe_kernel(%arg0: i32, %arg1: memref<8x128xf32, #tpu.memory_space<vmem>>, %arg2: memref<8x128xf32, #tpu.memory_space<vmem>>) attributes {dimension_semantics = [#tpu.dimension_semantics<arbitrary>], iteration_bounds = array<i64: 2>, scalar_prefetch = 0 : i64, scratch_operands = 0 : i64, tpu.core_type = #tpu.core_type<tc>, window_params = [{pipeline_mode = #tpu.pipeline_mode<synchronous>, transform_indices = @transform_0, window_bounds = array<i64: 8, 128>}, {transform_indices = @transform_1, window_bounds = array<i64: 8, 128>}]} {
    %c0 = arith.constant 0 : index
    %c0_0 = arith.constant 0 : index
    %0 = vector.load %arg1[%c0, %c0_0] : memref<8x128xf32, #tpu.memory_space<vmem>>, vector<8x128xf32>
    %c0_1 = arith.constant 0 : index
    %c0_2 = arith.constant 0 : index
    %1 = vector.load %arg2[%c0_1, %c0_2] : memref<8x128xf32, #tpu.memory_space<vmem>>, vector<8x128xf32>
    tpu.vector_store %arg2[%c0_1, %c0_2], %0 {strides = array<i32>} : memref<8x128xf32, #tpu.memory_space<vmem>>, vector<8x128xf32>,
    return
  }
  func.func @transform_0(%arg0: i32) -> (i32, i32) {
    %c0_i32 = arith.constant 0 : i32
    %c0_i32_0 = arith.constant 0 : i32
    %c0_i32_1 = arith.constant 0 : i32
    return %c0_i32, %c0_i32_0 : i32, i32
  }
  func.func @transform_1(%arg0: i32) -> (i32, i32) {
    %c0_i32 = arith.constant 0 : i32
    %c0_i32_0 = arith.constant 0 : i32
    return %arg0, %c0_i32 : i32, i32
  }
}

module attributes {stable_mosaic.version = 11 : i64} {
  func.func @_layernorm_kernel(%arg0: i32, %arg1: memref<1x16x768xf32, #tpu.memory_space<vmem>>, %arg2: memref<1x768xf32, #tpu.memory_space<vmem>>, %arg3: memref<1x768xf32, #tpu.memory_space<vmem>>, %arg4: memref<1x16x768xf32, #tpu.memory_space<vmem>>) attributes {dimension_semantics = [#tpu.dimension_semantics<parallel>], iteration_bounds = array<i64: 2>, scalar_prefetch = 0 : i64, scratch_operands = 0 : i64, tpu.core_type = #tpu.core_type<tc>, window_params = [{transform_indices = @transform_0, window_bounds = array<i64: 1, 16, 768>}, {pipeline_mode = #tpu.pipeline_mode<synchronous>, transform_indices = @transform_1, window_bounds = array<i64: 1, 768>}, {pipeline_mode = #tpu.pipeline_mode<synchronous>, transform_indices = @transform_2, window_bounds = array<i64: 1, 768>}, {transform_indices = @transform_3, window_bounds = array<i64: 1, 16, 768>}]} {
    %c0 = arith.constant 0 : index
    %c0_0 = arith.constant 0 : index
    %c0_1 = arith.constant 0 : index
    %0 = vector.load %arg1[%c0, %c0_0, %c0_1] : memref<1x16x768xf32, #tpu.memory_space<vmem>>, vector<1x16x768xf32>
    %1 = vector.shape_cast %0 : vector<1x16x768xf32> to vector<16x768xf32>
    %cst = arith.constant dense<0.000000e+00> : vector<16xf32>
    %2 = vector.multi_reduction <add>, %1, %cst [1] : vector<16x768xf32> to vector<16xf32>
    %3 = vector.shape_cast %2 : vector<16xf32> to vector<16x1xf32>
    %cst_2 = arith.constant 7.680000e+02 : f32
    %4 = vector.broadcast %cst_2 : f32 to vector<16x1xf32>
    %5 = arith.divf %3, %4 : vector<16x1xf32>
    %6 = vector.broadcast %5 : vector<16x1xf32> to vector<16x768xf32>
    %7 = arith.subf %1, %6 : vector<16x768xf32>
    %8 = arith.mulf %7, %7 : vector<16x768xf32>
    %cst_3 = arith.constant dense<0.000000e+00> : vector<16xf32>
    %9 = vector.multi_reduction <add>, %8, %cst_3 [1] : vector<16x768xf32> to vector<16xf32>
    %10 = vector.shape_cast %9 : vector<16xf32> to vector<16x1xf32>
    %cst_4 = arith.constant 7.680000e+02 : f32
    %11 = vector.broadcast %cst_4 : f32 to vector<16x1xf32>
    %12 = arith.divf %10, %11 : vector<16x1xf32>
    %13 = vector.broadcast %5 : vector<16x1xf32> to vector<16x768xf32>
    %14 = arith.subf %1, %13 : vector<16x768xf32>
    %cst_5 = arith.constant 9.99999996E-13 : f32
    %15 = vector.broadcast %cst_5 : f32 to vector<16x1xf32>
    %16 = arith.addf %12, %15 : vector<16x1xf32>
    %17 = math.rsqrt %16 : vector<16x1xf32>
    %18 = vector.broadcast %17 : vector<16x1xf32> to vector<16x768xf32>
    %19 = arith.mulf %14, %18 : vector<16x768xf32>
    %c0_6 = arith.constant 0 : index
    %c0_7 = arith.constant 0 : index
    %20 = vector.load %arg2[%c0_6, %c0_7] : memref<1x768xf32, #tpu.memory_space<vmem>>, vector<1x768xf32>
    %21 = vector.broadcast %20 : vector<1x768xf32> to vector<16x768xf32>
    %22 = arith.mulf %19, %21 : vector<16x768xf32>
    %c0_8 = arith.constant 0 : index
    %c0_9 = arith.constant 0 : index
    %23 = vector.load %arg3[%c0_8, %c0_9] : memref<1x768xf32, #tpu.memory_space<vmem>>, vector<1x768xf32>
    %24 = vector.broadcast %23 : vector<1x768xf32> to vector<16x768xf32>
    %25 = arith.addf %22, %24 : vector<16x768xf32>
    %c0_10 = arith.constant 0 : index
    %c0_11 = arith.constant 0 : index
    %c0_12 = arith.constant 0 : index
    %26 = vector.load %arg4[%c0_10, %c0_11, %c0_12] : memref<1x16x768xf32, #tpu.memory_space<vmem>>, vector<1x16x768xf32>
    %27 = vector.shape_cast %26 : vector<1x16x768xf32> to vector<16x768xf32>
    %28 = vector.shape_cast %25 : vector<16x768xf32> to vector<1x16x768xf32>
    tpu.vector_store %arg4[%c0_10, %c0_11, %c0_12], %28 {strides = array<i32>} : memref<1x16x768xf32, #tpu.memory_space<vmem>>, vector<1x16x768xf32>,
    return
  }
  func.func @transform_0(%arg0: i32) -> (i32, i32, i32) {
    %c0_i32 = arith.constant 0 : i32
    %c0_i32_0 = arith.constant 0 : i32
    %c0_i32_1 = arith.constant 0 : i32
    return %arg0, %c0_i32, %c0_i32_0 : i32, i32, i32
  }
  func.func @transform_1(%arg0: i32) -> (i32, i32) {
    %c0_i32 = arith.constant 0 : i32
    %c0_i32_0 = arith.constant 0 : i32
    %c0_i32_1 = arith.constant 0 : i32
    return %c0_i32, %c0_i32_0 : i32, i32
  }
  func.func @transform_2(%arg0: i32) -> (i32, i32) {
    %c0_i32 = arith.constant 0 : i32
    %c0_i32_0 = arith.constant 0 : i32
    %c0_i32_1 = arith.constant 0 : i32
    return %c0_i32, %c0_i32_0 : i32, i32
  }
  func.func @transform_3(%arg0: i32) -> (i32, i32, i32) {
    %c0_i32 = arith.constant 0 : i32
    %c0_i32_0 = arith.constant 0 : i32
    %c0_i32_1 = arith.constant 0 : i32
    return %arg0, %c0_i32, %c0_i32_0 : i32, i32, i32
  }
}

</mosaic_0001>

<bundles_post_ra>
// kernel: tpu_custom_call.1
= control target key start
LH: loop header
LB: loop body
LE: loop exit
PB: predicated region body
PF: predicated region fallthrough
CT: control target
= control target key end

     0   :  { %6 = vsyncpa [#allocation3], 0  ;;  %s440_s0 = inlined_call_operand.hbm [shape: f32[8,128], index: 0, kind: input, shape index: {}]   ;;  %s441_s1 = inlined_call_operand.hbm [shape: f32[16,128], index: 1, kind: output, shape index: {}]  }
   0x1   :  { %7 = vsyncpa [#allocation4], 0 }
   0x2   :  { %9 = vsyncpa [#allocation4 + $0x1], 0  ;;  %s356_s6 = smov 0   ;;  %s358_s7 = smov 0  }
   0x3   :  { %s360_s8 = smov 0   ;;  %s362_s9 = smov 0  }
   0x4 LB: > { %s377_s10 = sadd.s32 4294967295, %s343_s9   ;;  %s187_s11 = sadd.s32 4294967294, %s343_s9   ;;  %s343_s9 = sphi %s362_s9, %s447_s9   ;;  %s339_s8 = sphi %s360_s8, %s446_s8   ;;  %s335_s7 = sphi %s358_s7, %s445_s7   ;;  %s331_s6 = sphi %s356_s6, %s444_s6  }
   0x5   : > { %s381_s12 = sadd.s32 1, %s343_s9   ;;  %s43_s13 = sadd.s32 1, %s339_s8 }
   0x6   : > { %s40_s14 = ssub.s32 %s343_s9, %s381_s12  ;;  %p53_p0 = scmp.ne.s32.totalorder %s339_s8, %s335_s7 }
   0x7   : > { %p41_p1 = scmp.eq.s32.totalorder %s40_s14, 0  ;;  %p54_p2 = scmp.eq.s32.totalorder %s377_s10, 1 }
   0x8   : > { %p59_p3 = scmp.ne.s32.totalorder %s335_s7, %s331_s6  ;;  %p60_p4 = scmp.eq.s32.totalorder %s187_s11, 1 }
   0x9   : > { %s392_s15 = scalar_select %p41_p1, %s339_s8, %s43_s13  }
   0xa   : > { %p394_p5 = por %p54_p2, %p53_p0  ;;  %p398_p6 = por %p60_p4, %p59_p3 }
   0xb   : > { %p188_p7 = scmp.ge.s32.totalorder %s343_s9, 1  ;;  %p67_p8 = scmp.lt.s32.totalorder %s343_s9, 3 }
   0xc   : > { %p211_p9 = scmp.eq.s32.totalorder %s377_s10, 0  ;;  %s79_s20 = sshll.u32 %s440_s0, 4  ;;  %s80_s20 = int_to_ptr.hbm [resolvable:$true] %s79_s20 }
   0xd   : > { %p68_p10 = pnand %p188_p7, %p67_p8  ;;  %s345_s21 = smov [#allocation2]  }
   0xe   : > { %s81_s22 = sshll.u32 %s345_s21, 4  ;;  %s82_s22 = int_to_ptr.vmem [resolvable:$true] %s81_s22 }
   0xf   : > { %p203_p11 = pneg %p68_p10  ;;  %94 = sbr.rel (%p68_p10) target bundleno = 37 (0x25), region = 24 }
  0x11   : > { %p204_p12 = pnand %p211_p9, %p203_p11 }
  0x13   : > { %206 = dma.hbm_to_vmem [thread:$0]  (!%p204_p12), %s80_s20, 128, %s82_s22, [#allocation3]  }
  0x14   : > { %322 = dma.done.wait (%p211_p9), [#allocation3], 128  }
  0x15   : > { %324 = vsyncadd (%p211_p9), [#allocation3], 4294967168  ;;  %s107_s23 = sand.u32 1, %s335_s7   ;;  %s194_s24 = sshll.u32 %s377_s10, 3  ;;  %v110_v0 = vld [vmem:[#allocation2] sm:$0xff] }
  0x16   : > { %s192_s25 = sshll.u32 %s107_s23, 3  ;;  %s123_s28 = scalar_lea.hbm %s441_s1, %s194_s24 }
  0x17   : > { %s109_s29 = scalar_lea.vmem [#allocation5], %s192_s25  ;;  %s127_s2 = sshll.u32 %s123_s28, 4  ;;  %s128_s2 = int_to_ptr.hbm [resolvable:$true] %s127_s2 }
  0x18   : > { %s125_s30 = sshll.u32 %s109_s29, 4  ;;  %111 = vst [vmem:[%s109_s29] sm:$0xff] %v110_v0  ;;  %s113_s3 = scalar_lea.sflag [#allocation4], %s107_s23  ;;  %s126_s30 = int_to_ptr.vmem [resolvable:$true] %s125_s30 }
  0x19   : > { %s291_s4 = sshra.s32 %s128_s2, 4  ;;  %s297_s13 = scalar_lea.hbm %s441_s1, 16  ;;  %s292_s4 = int_to_ptr.hbm [resolvable:$true] %s291_s4 }
  0x1a   : > { %s293_s5 = scalar_lea.hbm %s292_s4, 8  ;;  %p298_p2 = scmp.lt.s32.totalorder %s292_s4, %s441_s1 }
  0x1b   : > { %p294_p13 = scmp.ne.s32.totalorder %s292_s4, %s293_s5  ;;  %p299_p3 = scmp.lt.s32.totalorder %s297_s13, %s293_s5 }
  0x1d   : > { %p295_p0 = pnand %p294_p13, %p394_p5  ;;  %p300_p4 = por %p299_p3, %p298_p2 }
  0x1f   : > { %p296_p1 = pneg %p295_p0 }
  0x21   : > { %p301_p7 = pnand %p300_p4, %p296_p1 }
  0x23   : > { %304 = shalt.err (!%p301_p7)
}
  0x24   : > { %201 = dma.vmem_to_hbm [thread:$0]  (%p394_p5), %s126_s30, 128, %s128_s2, %s113_s3  }
  0x25 PF: > { %p213_p8 = scmp.ge.s32.totalorder %s343_s9, 2  ;;  %s139_s19 = sand.u32 1, %s331_s6  }
  0x26   : > { %s140_s20 = scalar_lea.sflag [#allocation4], %s139_s19 }
  0x27   : > { %p208_p9 = pnand %p213_p8, %p398_p6 }
  0x29   : > { %p209_p10 = pneg %p208_p9 }
  0x2b   : > { %326 = dma.done.wait (%p209_p10), %s140_s20, 128  }
  0x2c   : > { %328 = vsyncadd (%p209_p10), %s140_s20, 4294967168  ;;  %p12_p11 = scmp.ge.s32.totalorder %s381_s12, 4   ;;  %s444_s6 = smov %s335_s7 }
  0x2d   : > { %s445_s7 = smov %s339_s8  ;;  %s446_s8 = smov %s392_s15 }
  0x2e   : > { %s447_s9 = smov %s381_s12  ;;  %14 = sbr.rel (!%p12_p11) target bundleno = 4 (0x4), region = 61 }
  0x33   :  { %146 = vsyncpa [#allocation3], 1 }
  0x34   :  { %148 = vsyncpa [#allocation3 + $0x1], 1 }
  0x35   :  { %149 = vsyncpa [#allocation4], 1 }
  0x36   :  { %151 = vsyncpa [#allocation4 + $0x1], 1 }

// kernel: tpu_custom_call.1
= control target key start
LH: loop header
LB: loop body
LE: loop exit
PB: predicated region body
PF: predicated region fallthrough
CT: control target
= control target key end

     0   :  { %8 = vsyncpa [#allocation3], 0  ;;  %s1024_s0 = inlined_call_operand.hbm [shape: f32[2,16,768], index: 0, kind: input, shape index: {}]   ;;  %s1025_s1 = inlined_call_operand.hbm [shape: f32[1,768], index: 1, kind: input, shape index: {}]   ;;  %s1026_s2 = inlined_call_operand.hbm [shape: f32[1,768], index: 2, kind: input, shape index: {}]   ;;  %s1027_s3 = inlined_call_operand.hbm [shape: f32[2,16,768], index: 3, kind: output, shape index: {}]  }
   0x1   :  { %10 = vsyncpa [#allocation3 + $0x1], 0 }
   0x2   :  { %11 = vsyncpa [#allocation6], 0 }
   0x3   :  { %12 = vsyncpa [#allocation4], 0 }
   0x4   :  { %14 = vsyncpa [#allocation4 + $0x1], 0  ;;  %s784_s12 = smov 0   ;;  %s786_s13 = smov 0  }
   0x5   :  { %s788_s14 = smov 0   ;;  %s790_s15 = smov 0  }
   0x6 LB: > { %s805_s16 = sadd.s32 4294967295, %s755_s15   ;;  %s501_s17 = sadd.s32 4294967294, %s755_s15   ;;  %s755_s15 = sphi %s790_s15, %s1038_s15   ;;  %s751_s14 = sphi %s788_s14, %s1037_s14   ;;  %s747_s13 = sphi %s786_s13, %s1036_s13   ;;  %s743_s12 = sphi %s784_s12, %s1035_s12  }
   0x7   : > { %s809_s18 = sadd.s32 1, %s755_s15   ;;  %s27_s19 = sadd.s32 1, %s751_s14 }
   0x8   : > { %s24_s20 = ssub.s32 %s755_s15, %s809_s18  ;;  %p34_p0 = scmp.ne.s32.totalorder %s751_s14, %s747_s13 }
   0x9   : > { %p25_p1 = scmp.eq.s32.totalorder %s24_s20, 0  ;;  %p35_p2 = scmp.eq.s32.totalorder %s755_s15, 0 }
   0xa   : > { %p40_p3 = scmp.ne.s32.totalorder %s747_s13, %s743_s12  ;;  %p41_p4 = scmp.eq.s32.totalorder %s805_s16, 0 }
   0xb   : > { %s821_s21 = scalar_select %p25_p1, %s751_s14, %s27_s19  }
   0xc   : > { %p823_p5 = por %p35_p2, %p34_p0  ;;  %p829_p6 = por %p41_p4, %p40_p3 }
   0xd   : > { %p106_p7 = scmp.eq.s32.totalorder %s805_s16, 1  ;;  %p112_p8 = scmp.eq.s32.totalorder %s501_s17, 1 }
   0xe   : > { %p502_p9 = scmp.ge.s32.totalorder %s755_s15, 1  ;;  %p119_p10 = scmp.lt.s32.totalorder %s755_s15, 3 }
   0xf   : > { %p836_p11 = por %p106_p7, %p34_p0  ;;  %p840_p12 = por %p112_p8, %p40_p3 }
  0x10   : > { %p844_p13 = pnand %p502_p9, %p119_p10  ;;  %s131_s29 = sshll.u32 %s1025_s1, 4  ;;  %s132_s29 = int_to_ptr.hbm [resolvable:$true] %s131_s29 }
  0x11   : > { %s757_s30 = smov [#allocation5]   ;;  %p546_p3 = scmp.lt.s32.totalorder %s755_s15, 2 }
  0x12   : > { %p529_p1 = pneg %p844_p13  ;;  %s133_s4 = sshll.u32 %s757_s30, 4  ;;  %s134_s4 = int_to_ptr.vmem [resolvable:$true] %s133_s4 }
  0x13   : > { %s143_s7 = sshll.u32 %s1026_s2, 4  ;;  %p862_p7 = pnand %p546_p3, %p823_p5  ;;  %s144_s7 = int_to_ptr.hbm [resolvable:$true] %s143_s7 }
  0x14   : > { %p530_p2 = pnand %p529_p1, %p41_p4  ;;  %s758_s9 = smov [#allocation7]  }
  0x15   : > { %s145_s10 = sshll.u32 %s758_s9, 4  ;;  %s156_s11 = sand.u32 1, %s751_s14   ;;  %s146_s10 = int_to_ptr.vmem [resolvable:$true] %s145_s10 }
  0x16   : > { %532 = dma.hbm_to_vmem [thread:$0]  (!%p530_p2), %s132_s29, 96, %s134_s4, [#allocation6]  }
  0x17   : > { %535 = dma.hbm_to_vmem [thread:$0]  (!%p530_p2), %s144_s7, 96, %s146_s10, [#allocation6]  }
  0x18   : > { %s513_s17 = smul.u32 96, %s156_s11  ;;  %s157_s22 = scalar_lea.sflag [#allocation3], %s156_s11 }
  0x19   : > { %s514_s19 = smul.u32 96, %s755_s15  ;;  %p659_p8 = pneg %p862_p7 }
  0x1a   : > { %s160_s30 = scalar_lea.vmem [#allocation2], %s513_s17  ;;  %s662_s10 = scalar_lea.hbm %s1024_s0, 192 }
  0x1b   : > { %s165_s28 = scalar_lea.hbm %s1024_s0, %s514_s19  ;;  %s168_s5 = sshll.u32 %s160_s30, 4  ;;  %s169_s5 = int_to_ptr.vmem [resolvable:$true] %s168_s5 }
  0x1c   : > { %s166_s29 = sshll.u32 %s165_s28, 4  ;;  %s167_s29 = int_to_ptr.hbm [resolvable:$true] %s166_s29 }
  0x1d   : > { %s655_s4 = sshra.s32 %s167_s29, 4  ;;  %s656_s4 = int_to_ptr.hbm [resolvable:$true] %s655_s4 }
  0x1e   : > { %s657_s6 = scalar_lea.hbm %s656_s4, 96  ;;  %p663_p1 = scmp.lt.s32.totalorder %s656_s4, %s1024_s0 }
  0x1f   : > { %p658_p5 = scmp.ne.s32.totalorder %s656_s4, %s657_s6  ;;  %p664_p2 = scmp.lt.s32.totalorder %s662_s10, %s657_s6 }
  0x21   : > { %p660_p9 = pnand %p659_p8, %p658_p5  ;;  %p665_p3 = por %p664_p2, %p663_p1 }
  0x23   : > { %p661_p10 = pneg %p660_p9 }
  0x25   : > { %p666_p0 = pnand %p665_p3, %p661_p10 }
  0x27   : > { %669 = shalt.err (!%p666_p0)
}
  0x28   : > { %s759_s11 = smov 768   ;;  %s760_s17 = smov 48  }
  0x29   : > { %539 = dma.hbm_to_vmem [thread:$0]  (!%p862_p7), %s167_s29, 1536, %s169_s5, %s157_s22, %s759_s11, %s759_s11, %s760_s17  }
  0x2a   : > { %180 = sbr.rel (%p844_p13) target bundleno = 354 (0x162), region = 32  ;;  %s884_s27 = sand.u32 (!%p844_p13), 1, %s747_s13  }
  0x2b   : > { %s515_s28 = smul.u32 (!%p844_p13), 96, %s884_s27  ;;  %s183_s30 = scalar_lea.sflag (!%p844_p13), [#allocation3], %s884_s27 }
  0x2d   : > { %s186_s4 = scalar_lea.vmem (!%p844_p13), [#allocation2], %s515_s28 }
  0x2f   : > { %730 = dma.done.wait (%p829_p6), %s183_s30, 1536  }
  0x30   : > { %732 = vsyncadd (%p829_p6), %s183_s30, 4294965760 }
  0x31   : > { %734 = dma.done.wait (%p41_p4), [#allocation6], 192  }
  0x32   : > { %736 = vsyncadd (%p41_p4), [#allocation6], 4294967104  ;;  %v220_v0 = vld [vmem:[%s186_s4] sm:$0xff]  ;;  %v221_v1 = vld [vmem:[%s186_s4 + $0x8] sm:$0xff]  ;;  %v761_v22 = vmov 768.0   ;;  %s970_s23 = scalar_lea.vmem [#allocation8], %s515_s28 }
  0x33   : > { %v222_v2 = vld [vmem:[%s186_s4 + $0x10] sm:$0xff]  ;;  %v223_v3 = vld [vmem:[%s186_s4 + $0x18] sm:$0xff]  ;;  %v232_v4 = vadd.f32 %v221_v1, %v220_v0  ;;  %v228_v7 = vld [vmem:[%s186_s4 + $0x40] sm:$0xff]  ;;  %589 = vrcp.f32 %v761_v22  ;;  %s516_s26 = smul.u32 96, %s805_s16  ;;  %s406_s29 = sshll.u32 %s970_s23, 4  ;;  %s407_s29 = int_to_ptr.vmem [resolvable:$true] %s406_s29 }
  0x34   : > { %v226_v5 = vld [vmem:[%s186_s4 + $0x30] sm:$0xff]  ;;  %v227_v6 = vld [vmem:[%s186_s4 + $0x38] sm:$0xff]  ;;  %v224_v10 = vld [vmem:[%s186_s4 + $0x20] sm:$0xff]  ;;  %s394_s6 = scalar_lea.sflag [#allocation4], %s884_s27  ;;  %s705_s19 = scalar_lea.hbm %s1027_s3, 192 }
  0x35   : > { %v233_v8 = vadd.f32 %v232_v4, %v222_v2  ;;  %v239_v9 = vadd.f32 %v227_v6, %v226_v5  ;;  %v229_v11 = vld [vmem:[%s186_s4 + $0x48] sm:$0xff]  ;;  %v230_v17 = vld [vmem:[%s186_s4 + $0x50] sm:$0xff]  ;;  %v231_v20 = vld [vmem:[%s186_s4 + $0x58] sm:$0xff]  ;;  %s405_s5 = scalar_lea.hbm %s1027_s3, %s516_s26 }
  0x36   : > { %v225_v14 = vld [vmem:[%s186_s4 + $0x28] sm:$0xff]  ;;  %s408_s22 = sshll.u32 %s405_s5, 4  ;;  %s409_s22 = int_to_ptr.hbm [resolvable:$true] %s408_s22 }
  0x37   : > { %v234_v12 = vadd.f32 %v233_v8, %v223_v3  ;;  %v240_v13 = vadd.f32 %v239_v9, %v228_v7  ;;  %s699_s7 = sshra.s32 %s409_s22, 4  ;;  %s700_s7 = int_to_ptr.hbm [resolvable:$true] %s699_s7 }
  0x38   : > { %s701_s9 = scalar_lea.hbm %s700_s7, 96  ;;  %p706_p0 = scmp.lt.s32.totalorder %s700_s7, %s1027_s3 }
  0x39   : > { %v235_v15 = vadd.f32 %v234_v12, %v224_v10  ;;  %v241_v16 = vadd.f32 %v240_v13, %v229_v11  ;;  %v590_v23 = vpop.eup %589  ;;  %v946_v12 = vld [vmem:[#allocation5] sm:$0x3f]  ;;  %p702_p4 = scmp.ne.s32.totalorder %s700_s7, %s701_s9  ;;  %p707_p7 = scmp.lt.s32.totalorder %s705_s19, %s701_s9 }
  0x3a   : > { %v247_v24 = vmul.f32 768.0, %v590_v23  ;;  %vm251_vm0 = vweird.f32 %v590_v23 }
  0x3b   : > { %v236_v18 = vadd.f32 %v235_v15, %v225_v14  ;;  %v242_v19 = vadd.f32 %v241_v16, %v230_v17  ;;  %p703_p6 = pnand %p702_p4, %p836_p11  ;;  %p708_p5 = por %p707_p7, %p706_p0 }
  0x3c   : > { %v248_v25 = vsub.f32 1.0, %v247_v24  ;;  %v336_v24 = vperm.slane %v946_v12, 5 }
  0x3d   : > { %237 = vadd.xlane.f32.xlu0 %v236_v18  ;;  %v243_v21 = vadd.f32 %v242_v19, %v231_v20  ;;  %v332_v18 = vperm.slane %v946_v12, 1  ;;  %v333_v19 = vperm.slane %v946_v12, 2  ;;  %p704_p13 = pneg %p703_p6 }
  0x3e   : > { %v249_v26 = vmul.f32 %v590_v23, %v248_v25 }
  0x3f   : > { %p709_p8 = pnand %p708_p5, %p704_p13 }
  0x40   : > { %v250_v27 = vadd.f32 %v590_v23, %v249_v26 }
  0x42   : > { %v252_v28 = vsel %vm251_vm0, %v590_v23, %v250_v27 }
  0x45   : > { %244 = vadd.xlane.f32.xlu0 %v243_v21  ;;  %v335_v21 = vperm.slane %v946_v12, 4 }
  0xb0   : > { %v238_v29 = vpop.xlane.xlu0 %237 }
  0xb1   : > { %v253_v30 = vmul.f32 %v252_v28, %v238_v29 }
  0xb3   : > { %v898_v31 = vsub.f32 %v220_v0, %v253_v30  ;;  %v900_v32 = vsub.f32 %v221_v1, %v253_v30  ;;  %v902_v33 = vsub.f32 %v222_v2, %v253_v30  ;;  %v904_v34 = vsub.f32 %v223_v3, %v253_v30 }
  0xb4   : > { %v910_v37 = vsub.f32 %v224_v10, %v253_v30  ;;  %v914_v41 = vsub.f32 %v225_v14, %v253_v30  ;;  %v948_v14 = vld [vmem:[#allocation7] sm:$0x3f] }
  0xb5   : > { %v267_v35 = vmul.f32 %v898_v31, %v898_v31  ;;  %v268_v36 = vmul.f32 %v900_v32, %v900_v32  ;;  %v269_v38 = vmul.f32 %v902_v33, %v902_v33  ;;  %v270_v43 = vmul.f32 %v904_v34, %v904_v34 }
  0xb6   : > { %v271_v45 = vmul.f32 %v910_v37, %v910_v37  ;;  %v272_v50 = vmul.f32 %v914_v41, %v914_v41  ;;  %v357_v25 = vperm.slane %v948_v14, 0  ;;  %v358_v26 = vperm.slane %v948_v14, 1 }
  0xb7   : > { %v279_v39 = vadd.f32 %v268_v36, %v267_v35  ;;  %v359_v27 = vperm.slane %v948_v14, 2  ;;  %v361_v29 = vperm.slane %v948_v14, 4 }
  0xb8   : > { %v245_v40 = vpop.xlane.xlu0 %244 }
  0xb9   : > { %v254_v42 = vmul.f32 %v252_v28, %v245_v40  ;;  %v280_v44 = vadd.f32 %v279_v39, %v269_v38 }
  0xbb   : > { %v281_v46 = vadd.f32 %v280_v44, %v270_v43  ;;  %v920_v47 = vsub.f32 %v226_v5, %v254_v42  ;;  %v922_v48 = vsub.f32 %v227_v6, %v254_v42  ;;  %v924_v49 = vsub.f32 %v228_v7, %v254_v42 }
  0xbc   : > { %v928_v52 = vsub.f32 %v229_v11, %v254_v42  ;;  %v934_v56 = vsub.f32 %v230_v17, %v254_v42  ;;  %v938_v59 = vsub.f32 %v231_v20, %v254_v42  ;;  %v331_v17 = vperm.slane %v946_v12, 0 }
  0xbd   : > { %v282_v51 = vadd.f32 %v281_v46, %v271_v45  ;;  %v273_v53 = vmul.f32 %v920_v47, %v920_v47  ;;  %v274_v54 = vmul.f32 %v922_v48, %v922_v48  ;;  %v275_v57 = vmul.f32 %v924_v49, %v924_v49 }
  0xbe   : > { %v276_v60 = vmul.f32 %v928_v52, %v928_v52  ;;  %v277_v62 = vmul.f32 %v934_v56, %v934_v56  ;;  %v278_v0 = vmul.f32 %v938_v59, %v938_v59  ;;  %v334_v20 = vperm.slane %v946_v12, 3 }
  0xbf   : > { %v283_v55 = vadd.f32 %v282_v51, %v272_v50  ;;  %v286_v58 = vadd.f32 %v274_v54, %v273_v53  ;;  %v362_v42 = vperm.slane %v948_v14, 5 }
  0xc1   : > { %284 = vadd.xlane.f32.xlu1 %v283_v55  ;;  %v287_v61 = vadd.f32 %v286_v58, %v275_v57 }
  0xc3   : > { %v288_v63 = vadd.f32 %v287_v61, %v276_v60 }
  0xc5   : > { %v289_v1 = vadd.f32 %v288_v63, %v277_v62 }
  0xc7   : > { %v290_v2 = vadd.f32 %v289_v1, %v278_v0 }
  0xc9   : > { %291 = vadd.xlane.f32.xlu1 %v290_v2 }
 0x134   : > { %v285_v3 = vpop.xlane.xlu1 %284 }
 0x135   : > { %v293_v4 = vmul.f32 %v285_v3, %v252_v28 }
 0x137   : > { %v295_v5 = vadd.f32 1e-12, %v293_v4 }
 0x139   : > { %591 = vrsqrt.f32 %v295_v5  ;;  %vm303_vm2 = vweird.f32 %v295_v5 }
 0x13c   : > { %v292_v6 = vpop.xlane.xlu1 %291 }
 0x13d   : > { %v294_v7 = vmul.f32 %v292_v6, %v252_v28  ;;  %v360_v28 = vperm.slane %v948_v14, 3 }
 0x13f   : > { %v592_v8 = vpop.eup %591  ;;  %v296_v9 = vadd.f32 1e-12, %v294_v7 }
 0x140   : > { %v298_v10 = vmul.f32 %v592_v8, %v295_v5  ;;  %vm304_vm1 = vweird.f32 %v592_v8 }
 0x141   : > { %593 = vrsqrt.f32 %v296_v9  ;;  %vm305_vm3 = vmor %vm303_vm2, %vm304_vm1  ;;  %vm313_vm5 = vweird.f32 %v296_v9 }
 0x142   : > { %v299_v11 = vmul.f32 %v592_v8, %v298_v10 }
 0x144   : > { %v300_v13 = vmul.f32 0.5, %v299_v11 }
 0x146   : > { %v301_v15 = vsub.f32 1.5, %v300_v13 }
 0x147   : > { %v594_v16 = vpop.eup %593 }
 0x148   : > { %v302_v22 = vmul.f32 %v592_v8, %v301_v15  ;;  %v308_v23 = vmul.f32 %v594_v16, %v296_v9  ;;  %vm314_vm4 = vweird.f32 %v594_v16 }
 0x149   : > { %vm315_vm6 = vmor %vm313_vm5, %vm314_vm4 }
 0x14a   : > { %v306_v30 = vsel %vm305_vm3, %v592_v8, %v302_v22  ;;  %v309_v35 = vmul.f32 %v594_v16, %v308_v23 }
 0x14b   : > { %v317_v36 = vmul.f32 %v306_v30, %v898_v31  ;;  %v318_v38 = vmul.f32 %v306_v30, %v900_v32  ;;  %v319_v39 = vmul.f32 %v306_v30, %v902_v33  ;;  %v320_v40 = vmul.f32 %v306_v30, %v904_v34 }
 0x14c   : > { %v321_v43 = vmul.f32 %v306_v30, %v910_v37  ;;  %v322_v44 = vmul.f32 %v306_v30, %v914_v41  ;;  %v310_v45 = vmul.f32 0.5, %v309_v35 }
 0x14d   : > { %v343_v46 = vmul.f32 %v331_v17, %v317_v36  ;;  %v344_v50 = vmul.f32 %v332_v18, %v318_v38  ;;  %v345_v51 = vmul.f32 %v333_v19, %v319_v39  ;;  %v346_v53 = vmul.f32 %v334_v20, %v320_v40 }
 0x14e   : > { %v347_v31 = vmul.f32 %v335_v21, %v321_v43  ;;  %v348_v54 = vmul.f32 %v336_v24, %v322_v44  ;;  %v311_v32 = vsub.f32 1.5, %v310_v45 }
 0x14f   : > { %v369_v33 = vadd.f32 %v357_v25, %v343_v46  ;;  %v370_v55 = vadd.f32 %v358_v26, %v344_v50  ;;  %v371_v34 = vadd.f32 %v359_v27, %v345_v51  ;;  %v372_v57 = vadd.f32 %v360_v28, %v346_v53 }
 0x150   : > { %v312_v58 = vmul.f32 %v594_v16, %v311_v32  ;;  %v373_v37 = vadd.f32 %v361_v29, %v347_v31  ;;  %v374_v41 = vadd.f32 %v362_v42, %v348_v54 }
 0x151   : > { %381 = vst [vmem:[%s970_s23] sm:$0xff] %v369_v33 }
 0x152   : > { %382 = vst [vmem:[%s970_s23 + $0x8] sm:$0xff] %v370_v55  ;;  %v316_v60 = vsel %vm315_vm6, %v594_v16, %v312_v58 }
 0x153   : > { %383 = vst [vmem:[%s970_s23 + $0x10] sm:$0xff] %v371_v34  ;;  %v323_v61 = vmul.f32 %v316_v60, %v920_v47  ;;  %v324_v62 = vmul.f32 %v316_v60, %v922_v48  ;;  %v325_v63 = vmul.f32 %v316_v60, %v924_v49  ;;  %v326_v0 = vmul.f32 %v316_v60, %v928_v52 }
 0x154   : > { %384 = vst [vmem:[%s970_s23 + $0x18] sm:$0xff] %v372_v57  ;;  %v327_v1 = vmul.f32 %v316_v60, %v934_v56  ;;  %v328_v2 = vmul.f32 %v316_v60, %v938_v59 }
 0x155   : > { %385 = vst [vmem:[%s970_s23 + $0x20] sm:$0xff] %v373_v37  ;;  %v349_v3 = vmul.f32 %v331_v17, %v323_v61  ;;  %v350_v4 = vmul.f32 %v332_v18, %v324_v62  ;;  %v351_v5 = vmul.f32 %v333_v19, %v325_v63  ;;  %v352_v47 = vmul.f32 %v334_v20, %v326_v0 }
 0x156   : > { %386 = vst [vmem:[%s970_s23 + $0x28] sm:$0xff] %v374_v41  ;;  %v353_v48 = vmul.f32 %v335_v21, %v327_v1  ;;  %v354_v49 = vmul.f32 %v336_v24, %v328_v2 }
 0x157   : > { %v375_v52 = vadd.f32 %v357_v25, %v349_v3  ;;  %v376_v56 = vadd.f32 %v358_v26, %v350_v4  ;;  %v377_v59 = vadd.f32 %v359_v27, %v351_v5  ;;  %v378_v6 = vadd.f32 %v360_v28, %v352_v47 }
 0x158   : > { %v379_v7 = vadd.f32 %v361_v29, %v353_v48  ;;  %v380_v8 = vadd.f32 %v362_v42, %v354_v49 }
 0x159   : > { %387 = vst [vmem:[%s970_s23 + $0x30] sm:$0xff] %v375_v52 }
 0x15a   : > { %388 = vst [vmem:[%s970_s23 + $0x38] sm:$0xff] %v376_v56 }
 0x15b   : > { %389 = vst [vmem:[%s970_s23 + $0x40] sm:$0xff] %v377_v59 }
 0x15c   : > { %390 = vst [vmem:[%s970_s23 + $0x48] sm:$0xff] %v378_v6 }
 0x15d   : > { %391 = vst [vmem:[%s970_s23 + $0x50] sm:$0xff] %v379_v7 }
 0x15e   : > { %392 = vst [vmem:[%s970_s23 + $0x58] sm:$0xff] %v380_v8 }
 0x15f   : > { %712 = shalt.err (!%p709_p8)
}
 0x160   : > { %s762_s27 = smov 768   ;;  %s763_s28 = smov 48  }
 0x161   : > { %527 = dma.vmem_to_hbm [thread:$0]  (%p836_p11), %s407_s29, 1536, %s409_s22, %s394_s6, %s762_s27, %s762_s27, %s763_s28  }
 0x162 PF: > { %s423_s30 = sand.u32 1, %s743_s12   ;;  %p1034_p9 = scmp.ge.s32.totalorder %s755_s15, 2 }
 0x163   : > { %s424_s4 = scalar_lea.sflag [#allocation4], %s423_s30 }
 0x164   : > { %p541_p10 = pnand %p1034_p9, %p840_p12 }
 0x166   : > { %p542_p1 = pneg %p541_p10 }
 0x168   : > { %738 = dma.done.wait (%p542_p1), %s424_s4, 1536  }
 0x169   : > { %740 = vsyncadd (%p542_p1), %s424_s4, 4294965760  ;;  %p17_p2 = scmp.ge.s32.totalorder %s809_s18, 4   ;;  %s1035_s12 = smov %s747_s13 }
 0x16a   : > { %s1036_s13 = smov %s751_s14  ;;  %s1037_s14 = smov %s821_s21 }
 0x16b   : > { %s1038_s15 = smov %s809_s18  ;;  %19 = sbr.rel (!%p17_p2) target bundleno = 6 (0x6), region = 85 }
 0x170   :  { %430 = vsyncpa [#allocation3], 1 }
 0x171   :  { %432 = vsyncpa [#allocation3 + $0x1], 1 }
 0x172   :  { %433 = vsyncpa [#allocation6], 1 }
 0x173   :  { %434 = vsyncpa [#allocation4], 1 }
 0x174   :  { %436 = vsyncpa [#allocation4 + $0x1], 1 }

</bundles_post_ra>
